<compile_context>
chip_gen: v7x
topology: tpu7x:2x2x1
jax: 0.10.0
libtpu: 0.0.40
codegen_flags: <defaults>
</compile_context>

<pallas_src>
import jax
import jax.numpy as jnp
from jax.experimental import pallas as pl
from jax.experimental.pallas import tpu as pltpu


def _downconv_relu_kernel(x_ref, w_ref, b_ref, o_ref):
    """One grid step: (Cout, K) @ (K, TM) + bias, ReLU, lane-dense store.

    x_ref: (K, TM)     space-to-depth input tile (K = Cin*s^3, spatial lane-dense)
    w_ref: (Cout, K)   weights, resident across the whole grid
    b_ref: (Cout, 1)   f32 bias column
    o_ref: (Cout, TM)  channels-first output tile
    """
    acc = jnp.dot(w_ref[...], x_ref[...], preferred_element_type=jnp.float32)
    acc = acc + b_ref[...]                         # (Cout, TM) + (Cout, 1)
    o_ref[...] = jnp.maximum(acc, 0.0).astype(o_ref.dtype)


def _round_up(x, m):
    return ((x + m - 1) // m) * m


def _vmem_capacity_bytes(default=128 << 20):
    """Physical VMEM of the current TPU generation (128 MiB v5e/v6e, 64 MiB v7x)."""
    try:
        cap = getattr(pltpu.get_tpu_info(), "vmem_capacity_bytes", None)
        if cap:
            return int(cap)
    except Exception:
        pass
    return default


def _choose_block_m(m, k, cout, in_itemsize, out_itemsize, n_batch, tile_budget,
                    min_block=512, max_block=4096, min_total_steps=8):
    """Lane width of the x/out tiles (multiple of 128).

    Per-step VMEM estimate (double-buffered x and out tiles; the grid-invariant
    weights/bias are conservatively budgeted at two buffers as well):
        2*K*bm*in + 2*Cout*bm*out + 2*Cout*K*in + 2*Cout*128*4
    """
    m128 = _round_up(m, 128)
    fixed = 2 * cout * k * in_itemsize + 2 * cout * 128 * 4
    per_lane = 2 * k * in_itemsize + 2 * cout * out_itemsize
    fit = max((tile_budget - fixed) // per_lane, 128)
    bm = max(128, (fit // 128) * 128)          # largest 128-multiple that fits VMEM
    bm = min(bm, max_block, m128)              # never wider than the (padded) M axis
    # v7x has 2 TensorCores: want a few grid steps per core so the BlockSpec
    # pipeline hides HBM DMA behind the MXU, but keep tiles >= min_block lanes
    # (small tiles cost HBM roofline: 512 lanes ~85% vs 256 ~63%).
    while (n_batch * (-(-m128 // bm)) < min_total_steps
           and bm // 2 >= max(min_block, 128)):
        bm //= 2
    bm = max(128, (bm // 128) * 128)
    return bm


def downsampling_conv_block_forward(x_ncdhw, w_oidhw, b, *, stride=2,
                                     compute_dtype=None):
    """DownsamplingConvBlock.forward for normalization='none'.

    x_ncdhw: (N, Cin, D, H, W) float32
    w_oidhw: (Cout, Cin, s, s, s) float32   (PyTorch Conv3d weight layout)
    b:       (Cout,) float32
    compute_dtype: None keeps the conv operands in x's dtype (exact PyTorch f32
      numerics); jnp.bfloat16 halves HBM reads of the dominant operand and runs
      the MXU at native bf16 rate.  Accumulation, bias and ReLU stay f32.
    returns: (N, Cout, D//s, H//s, W//s) in x's dtype
    """
    s = stride
    N, Cin, D, H, W = x_ncdhw.shape
    Cout = w_oidhw.shape[0]
    Do, Ho, Wo = D // s, H // s, W // s
    K = Cin * s * s * s
    M = Do * Ho * Wo

    in_dtype = compute_dtype if compute_dtype is not None else x_ncdhw.dtype
    out_dtype = x_ncdhw.dtype
    in_sz = jnp.dtype(in_dtype).itemsize
    out_sz = jnp.dtype(out_dtype).itemsize

    phys_vmem = _vmem_capacity_bytes()
    tile_budget = phys_vmem // 4               # 32 MiB on v5e/v6e, 16 MiB on v7x
    block_m = _choose_block_m(M, K, Cout, in_sz, out_sz, N, tile_budget)
    m_pad = _round_up(M, block_m)

    # --- space-to-depth (exact im2col for kernel==stride, padding=0) --------------
    # With allow_input_fusion on the x operand, XLA may fuse this reshape/transpose
    # (and the optional bf16 cast / zero pad) into the pallas_call's input DMA
    # instead of materializing (N, K, M) in HBM, removing a full extra read+write
    # of x — the dominant cost of this memory-bound op.
    x = x_ncdhw[:, :, : Do * s, : Ho * s, : Wo * s].astype(in_dtype)
    x = x.reshape(N, Cin, Do, s, Ho, s, Wo, s)
    x = jnp.transpose(x, (0, 1, 3, 5, 7, 2, 4, 6))    # (N, Cin, s, s, s, Do, Ho, Wo)
    x_mat = x.reshape(N, K, M)
    if m_pad != M:
        # Lane-dense (unmasked vst) output stores need a 128-multiple spatial axis.
        x_mat = jnp.pad(x_mat, ((0, 0), (0, 0), (0, m_pad - M)))
    w_mat = w_oidhw.reshape(Cout, K).astype(in_dtype)
    b_col = b.astype(jnp.float32).reshape(Cout, 1)

    grid = (N, m_pad // block_m)

    flops = 2 * N * M * K * Cout
    bytes_accessed = (in_sz * (N * K * m_pad + Cout * K) + 4 * Cout
                      + out_sz * N * Cout * m_pad)

    # Explicit scoped-VMEM limit: required tiles plus headroom, never above physical.
    vmem_needed = (2 * K * block_m * in_sz + 2 * Cout * block_m * out_sz
                   + 2 * Cout * K * in_sz + 2 * Cout * 128 * 4)
    vmem_limit = int(min(phys_vmem - (8 << 20),
                         max(32 << 20, vmem_needed + (8 << 20))))

    out = pl.pallas_call(
        _downconv_relu_kernel,
        out_shape=jax.ShapeDtypeStruct((N, Cout, m_pad), out_dtype),
        grid_spec=pltpu.PrefetchScalarGridSpec(
            num_scalar_prefetch=0,
            grid=grid,
            in_specs=[
                # Leading batch dim squeezed: kernel refs are exactly (K, TM) and
                # (Cout, TM), i.e. vreg-native (sublane, lane) tiles.
                pl.BlockSpec((pl.Squeezed(), K, block_m), lambda n, m: (n, 0, m)),
                # Weights / bias are grid-invariant resident tiles (constant
                # index_map).  Their (possible) second pipeline buffer is already
                # accounted for in _choose_block_m's VMEM budget.
                pl.BlockSpec((Cout, K), lambda n, m: (0, 0)),
                pl.BlockSpec((Cout, 1), lambda n, m: (0, 0)),
            ],
            out_specs=pl.BlockSpec(
                (pl.Squeezed(), Cout, block_m), lambda n, m: (n, 0, m)),
        ),
        compiler_params=pltpu.CompilerParams(
            dimension_semantics=("parallel", "parallel"),
            # Allow XLA to fuse the space-to-depth producer chain of x into the
            # kernel's input DMA; weights/bias stay materialized.
            allow_input_fusion=[True, False, False],
            vmem_limit_bytes=vmem_limit,
        ),
        cost_estimate=pl.CostEstimate(
            flops=flops, transcendentals=0, bytes_accessed=bytes_accessed
        ),
    )(x_mat, w_mat, b_col)

    if m_pad != M:
        out = out[:, :, :M]
    # Channels-first output is already NCDHW-ordered: just un-flatten the spatial axis.
    return out.reshape(N, Cout, Do, Ho, Wo)


def init_downsampling_conv_block_params(key, n_filters_in, n_filters_out, stride=2):
    """Deterministic stand-in for nn.Conv3d default init."""
    kw, kb = jax.random.split(key)
    fan_in = n_filters_in * stride ** 3
    scale = 1.0 / jnp.sqrt(jnp.float32(fan_in))
    w = jax.random.uniform(
        kw, (n_filters_out, n_filters_in, stride, stride, stride),
        jnp.float32, -scale, scale,
    )
    b = jax.random.uniform(kb, (n_filters_out,), jnp.float32, -scale, scale)
    return w, b


def _reference_forward(x_ncdhw, w, b, *, stride=2):
    """Pure-JAX reference (lax conv) for the correctness check."""
    y = jax.lax.conv_general_dilated(
        x_ncdhw, w, window_strides=(stride,) * 3, padding="VALID",
        dimension_numbers=("NCDHW", "OIDHW", "NCDHW"),
    )
    return jnp.maximum(y + b.reshape(1, -1, 1, 1, 1), 0.0)


# TODO(synk): only the normalization='none' branch of DownsamplingConvBlock is
# implemented (the batchnorm/groupnorm/instancenorm variants are not).

if __name__ == "__main__":
    # DownsamplingConvBlock(n_filters_in=4, n_filters_out=8, stride=2, normalization='none')
    n_filters_in, n_filters_out, stride = 4, 8, 2
    N, D, H, W = 2, 16, 16, 16

    key = jax.random.PRNGKey(0)
    key, kx = jax.random.split(key)
    x = jax.random.normal(kx, (N, n_filters_in, D, H, W), jnp.float32)  # NCDHW

    w, b = init_downsampling_conv_block_params(key, n_filters_in, n_filters_out, stride)

    ref = jax.block_until_ready(_reference_forward(x, w, b, stride=stride))

    # Exact-numerics (f32) path — matches the PyTorch module.
    out = jax.block_until_ready(
        downsampling_conv_block_forward(x, w, b, stride=stride))
    assert out.shape == (N, n_filters_out, D // stride, H // stride, W // stride)
    assert jnp.max(jnp.abs(out - ref)) < 1e-4

    # bf16-operand perf path (f32 accumulate / bias / ReLU): looser tolerance
    # because of bf16 input rounding.
    out_bf16 = jax.block_until_ready(
        downsampling_conv_block_forward(
            x, w, b, stride=stride, compute_dtype=jnp.bfloat16))
    assert out_bf16.shape == out.shape
    assert jnp.max(jnp.abs(out_bf16 - ref)) < 5e-2

    print("KERNEL_OK")
</pallas_src>

<mosaic_0001>
module attributes {stable_mosaic.version = 11 : i64} {
  func.func @_downconv_relu_kernel(%arg0: i32, %arg1: i32, %arg2: memref<1x32x512xf32, #tpu.memory_space<vmem>>, %arg3: memref<8x32xf32, #tpu.memory_space<vmem>>, %arg4: memref<8x1xf32, #tpu.memory_space<vmem>>, %arg5: memref<1x8x512xf32, #tpu.memory_space<vmem>>) attributes {dimension_semantics = [#tpu.dimension_semantics<parallel>, #tpu.dimension_semantics<parallel>], iteration_bounds = array<i64: 2, 1>, scalar_prefetch = 0 : i64, scratch_operands = 0 : i64, tpu.core_type = #tpu.core_type<tc>, window_params = [{transform_indices = @transform_0, window_bounds = array<i64: 1, 32, 512>}, {pipeline_mode = #tpu.pipeline_mode<synchronous>, transform_indices = @transform_1, window_bounds = array<i64: 8, 32>}, {pipeline_mode = #tpu.pipeline_mode<synchronous>, transform_indices = @transform_2, window_bounds = array<i64: 8, 1>}, {transform_indices = @transform_3, window_bounds = array<i64: 1, 8, 512>}]} {
    %c0 = arith.constant 0 : index
    %c0_0 = arith.constant 0 : index
    %0 = vector.load %arg3[%c0, %c0_0] : memref<8x32xf32, #tpu.memory_space<vmem>>, vector<8x32xf32>
    %c0_1 = arith.constant 0 : index
    %c0_2 = arith.constant 0 : index
    %c0_3 = arith.constant 0 : index
    %1 = vector.load %arg2[%c0_1, %c0_2, %c0_3] : memref<1x32x512xf32, #tpu.memory_space<vmem>>, vector<1x32x512xf32>
    %2 = vector.shape_cast %1 : vector<1x32x512xf32> to vector<32x512xf32>
    %cst = arith.constant dense<0.000000e+00> : vector<8x512xf32>
    %3 = tpu.matmul %0, %2, %cst {dimension_numbers = #tpu.dot_dimension_numbers<[1], [0], [0], [1], [0, 0, 1, 1], [], []>} : vector<8x32xf32>, vector<32x512xf32>, vector<8x512xf32> -> vector<8x512xf32>
    %c0_4 = arith.constant 0 : index
    %c0_5 = arith.constant 0 : index
    %4 = vector.load %arg4[%c0_4, %c0_5] : memref<8x1xf32, #tpu.memory_space<vmem>>, vector<8x1xf32>
    %5 = vector.broadcast %4 : vector<8x1xf32> to vector<8x512xf32>
    %6 = arith.addf %3, %5 : vector<8x512xf32>
    %cst_6 = arith.constant 0.000000e+00 : f32
    %7 = vector.broadcast %cst_6 : f32 to vector<8x512xf32>
    %8 = arith.maximumf %6, %7 : vector<8x512xf32>
    %c0_7 = arith.constant 0 : index
    %c0_8 = arith.constant 0 : index
    %c0_9 = arith.constant 0 : index
    %9 = vector.load %arg5[%c0_7, %c0_8, %c0_9] : memref<1x8x512xf32, #tpu.memory_space<vmem>>, vector<1x8x512xf32>
    %10 = vector.shape_cast %9 : vector<1x8x512xf32> to vector<8x512xf32>
    %11 = vector.shape_cast %8 : vector<8x512xf32> to vector<1x8x512xf32>
    tpu.vector_store %arg5[%c0_7, %c0_8, %c0_9], %11 {strides = array<i32>} : memref<1x8x512xf32, #tpu.memory_space<vmem>>, vector<1x8x512xf32>,
    return
  }
  func.func @transform_0(%arg0: i32, %arg1: i32) -> (i32, i32, i32) {
    %c0_i32 = arith.constant 0 : i32
    %c0_i32_0 = arith.constant 0 : i32
    return %arg0, %c0_i32, %arg1 : i32, i32, i32
  }
  func.func @transform_1(%arg0: i32, %arg1: i32) -> (i32, i32) {
    %c0_i32 = arith.constant 0 : i32
    %c0_i32_0 = arith.constant 0 : i32
    %c0_i32_1 = arith.constant 0 : i32
    return %c0_i32, %c0_i32_0 : i32, i32
  }
  func.func @transform_2(%arg0: i32, %arg1: i32) -> (i32, i32) {
    %c0_i32 = arith.constant 0 : i32
    %c0_i32_0 = arith.constant 0 : i32
    %c0_i32_1 = arith.constant 0 : i32
    return %c0_i32, %c0_i32_0 : i32, i32
  }
  func.func @transform_3(%arg0: i32, %arg1: i32) -> (i32, i32, i32) {
    %c0_i32 = arith.constant 0 : i32
    %c0_i32_0 = arith.constant 0 : i32
    return %arg0, %c0_i32, %arg1 : i32, i32, i32
  }
}

</mosaic_0001>

<bundles_post_ra>
// kernel: tpu_custom_call.1
= control target key start
LH: loop header
LB: loop body
LE: loop exit
PB: predicated region body
PF: predicated region fallthrough
CT: control target
= control target key end

     0   :  { %8 = vsyncpa [#allocation3], 0  ;;  %s927_s0 = inlined_call_operand.hbm [shape: f32[2,32,512], index: 0, kind: input, shape index: {}]   ;;  %s928_s1 = inlined_call_operand.vmem [shape: f32[8,32], index: 1, kind: input, shape index: {}]   ;;  %s929_s2 = inlined_call_operand.vmem [shape: f32[8,1], index: 2, kind: input, shape index: {}]   ;;  %s930_s3 = inlined_call_operand.hbm [shape: f32[2,8,512], index: 3, kind: output, shape index: {}]  }
   0x1   :  { %10 = vsyncpa [#allocation3 + $0x1], 0 }
   0x2   :  { %11 = vsyncpa [#allocation4], 0 }
   0x3   :  { %13 = vsyncpa [#allocation4 + $0x1], 0  ;;  %s729_s12 = smov 0   ;;  %s731_s13 = smov 0  }
   0x4   :  { %s733_s14 = smov 0   ;;  %s735_s15 = smov 0  }
   0x5   :  { %s737_s16 = smov 0   ;;  %s739_s17 = smov 0  }
   0x6 LB: > { %s487_s18 = sadd.s32 4294967295, %s701_s17   ;;  %s488_s19 = sadd.s32 4294967294, %s701_s17   ;;  %s701_s17 = sphi %s739_s17, %s19_s17   ;;  %s697_s16 = sphi %s737_s16, %s945_s16   ;;  %s693_s15 = sphi %s735_s15, %s944_s15   ;;  %s689_s14 = sphi %s733_s14, %s943_s14   ;;  %s685_s13 = sphi %s731_s13, %s942_s13   ;;  %s681_s12 = sphi %s729_s12, %s941_s12  }
   0x7   : > { %s31_s20 = sadd.s32 1, %s697_s16  ;;  %s40_s21 = sadd.s32 1, %s689_s14 }
   0x8   : > { %p33_p0 = scmp.ge.s32.totalorder %s31_s20, 2  ;;  %p47_p1 = scmp.ne.s32.totalorder %s689_s14, %s685_s13 }
   0x9   : > { %p48_p2 = scmp.eq.s32.totalorder %s701_s17, 0  ;;  %p53_p3 = scmp.ne.s32.totalorder %s685_s13, %s681_s12 }
   0xa   : > { %s947_s20 = smov (%p33_p0, %s31_s20), 0  ;;  %p54_p5 = scmp.eq.s32.totalorder %s487_s18, 0 }
   0xb   : > { %p770_p4 = por %p48_p2, %p47_p1  ;;  %s35_s23 = ssub.s32 %s697_s16, %s947_s20 }
   0xc   : > { %p121_p6 = scmp.eq.s32.totalorder %s487_s18, 1  ;;  %p38_p7 = scmp.eq.s32.totalorder %s35_s23, 0 }
   0xd   : > { %p776_p8 = por %p54_p5, %p53_p3  ;;  %p127_p10 = scmp.eq.s32.totalorder %s488_s19, 1 }
   0xe   : > { %p780_p9 = por %p121_p6, %p47_p1  ;;  %p534_p13 = scmp.lt.s32.totalorder %s701_s17, 2 }
   0xf   : > { %s785_s26 = scalar_select %p38_p7, %s689_s14, %s40_s21  }
  0x10   : > { %s934_s25 = scalar_select %p780_p9, 1, 0 }
  0x11   : > { %p787_p11 = por %p127_p10, %p53_p3  ;;  %s153_s28 = sand.u32 1, %s689_s14  }
  0x12   : > { %s491_s29 = sshll.u32 %s153_s28, 7  ;;  %s504_s30 = sshll.u32 %s697_s16, 11 }
  0x13   : > { %s935_s27 = scalar_select %p787_p11, 1, 0 }
  0x14   : > { %s798_s6 = scalar_lea.hbm %s927_s0, %s504_s30  ;;  %s157_s7 = scalar_lea.vmem [#allocation2], %s491_s29 }
  0x15   : > { %s166_s8 = sshll.u32 %s157_s7, 4  ;;  %p804_p0 = pnand %p534_p13, %p770_p4  ;;  %s800_s8 = int_to_ptr.vmem [resolvable:$true] %s166_s8 }
  0x16   : > { %s809_s10 = scalar_lea.sflag [#allocation3], %s153_s28  ;;  %s589_s11 = scalar_lea.hbm %s798_s6, 2048 }
  0x17   : > { %p590_p2 = scmp.ne.s32.totalorder %s798_s6, %s589_s11  ;;  %p591_p3 = pneg %p804_p0 }
  0x18   : > { %s594_s21 = scalar_lea.hbm %s927_s0, 4096  ;;  %p595_p4 = scmp.lt.u32.totalorder %s798_s6, %s927_s0 }
  0x19   : > { %p592_p5 = pnand %p591_p3, %p590_p2  ;;  %p596_p7 = scmp.lt.u32.totalorder %s594_s21, %s589_s11 }
  0x1a   : > { %p598_p13 = scmp.lt.u32.totalorder %s589_s11, %s798_s6 }
  0x1b   : > { %p593_p6 = pneg %p592_p5  ;;  %p597_p10 = por %p596_p7, %p595_p4 }
  0x1d   : > { %p599_p12 = por %p598_p13, %p597_p10 }
  0x1f   : > { %p600_p1 = pnand %p599_p12, %p593_p6 }
  0x21   : > { %603 = shalt.err (!%p600_p1)
}
  0x22   : > { %s604_s28 = scalar_lea.vmem %s800_s8, 2048  ;;  %s703_s29 = smov [#allocation2]  }
  0x23   : > { %p605_p2 = scmp.ne.s32.totalorder %s800_s8, %s604_s28  ;;  %s609_s30 = sshll.u32 %s703_s29, 4  ;;  %s610_s30 = int_to_ptr.vmem [resolvable:$false] %s609_s30 }
  0x24   : > { %s611_s4 = scalar_lea.vmem %s610_s30, 4096  ;;  %p612_p9 = scmp.lt.s32.totalorder %s800_s8, %s610_s30 }
  0x25   : > { %p607_p5 = pnand %p605_p2, %p591_p3  ;;  %p613_p4 = scmp.lt.s32.totalorder %s611_s4, %s604_s28 }
  0x27   : > { %p608_p11 = pneg %p607_p5  ;;  %p614_p7 = por %p613_p4, %p612_p9 }
  0x29   : > { %p615_p10 = pnand %p614_p7, %p608_p11 }
  0x2b   : > { %618 = shalt.err (!%p615_p10)
}
  0x2c   : > { %s704_s5 = smov 512   ;;  %s705_s7 = smov 32  }
  0x2d   : > { %529 = dma.hbm_to_vmem [thread:$0]  (!%p804_p0), %s798_s6, 2048, %s800_s8, %s809_s10, %s704_s5, %s704_s5, %s705_s7  }
  0x2e   : > { %p174_p12 = scmp.lt.s32.totalorder %s701_s17, 3  ;;  %p937_p1 = scmp.ge.s32.totalorder %s701_s17, 1 }
  0x30   : > { %p175_p3 = pnand %p937_p1, %p174_p12 }
  0x31   : > { %s841_s11 = sand.u32 (!%p175_p3), 1, %s685_s13  }
  0x32   : > { %178 = sbr.rel (%p175_p3) target bundleno = 302 (0x12e), region = 32  ;;  %s495_s18 = sshll.u32 (!%p175_p3), %s841_s11, 7 }
  0x33   : > { %s181_s19 = scalar_lea.sflag (!%p175_p3), [#allocation3], %s841_s11  ;;  %s845_s21 = scalar_lea.vmem (!%p175_p3), [#allocation2], %s495_s18 }
  0x39   : > { %672 = dma.done.wait (%p776_p8), %s181_s19, 2048  }
  0x3a   : > { %674 = vsyncadd (%p776_p8), %s181_s19, 4294965248  ;;  %v706_v0 = vmov 0.0   ;;  %v707_v1 = vmov 0   ;;  %v211_v2 = vld [vmem:[%s845_s21 + $0x8] sm:$0xff]  ;;  %v213_v4 = vld [vmem:[%s845_s21 + $0x18] sm:$0xff]  ;;  %vm232_vm0 = vcmask 261120  }
  0x3b   : > { %300 = vmatprep.mubr.f32.mxu0 %v706_v0  ;;  %371 = vmatprep.mubr.f32.mxu1 %v706_v0  ;;  %v215_v3 = vld [vmem:[%s845_s21 + $0x28] sm:$0xff]  ;;  %v217_v6 = vld [vmem:[%s845_s21 + $0x38] sm:$0xff]  ;;  %v210_v7 = vld [vmem:[%s845_s21] sm:$0xff]  ;;  %s496_s10 = sshll.u32 %s841_s11, 5  ;;  %s505_s22 = sshll.u32 %s693_s15, 9 }
  0x3c   : > { %588 = vset.pattern.permute.xlu0 %v707_v1  ;;  %v506_v5 = vpack.c.bf16 %v215_v3, %v211_v2  ;;  %v214_v8 = vld [vmem:[%s845_s21 + $0x20] sm:$0xff]  ;;  %v514_v9 = vpack.c.bf16 %v217_v6, %v213_v4  ;;  %v212_v11 = vld [vmem:[%s845_s21 + $0x10] sm:$0xff]  ;;  %v219_v13 = vld [vmem:[%s845_s21 + $0x48] sm:$0xff]  ;;  %s206_s23 = scalar_lea.vmem [#allocation5], %s496_s10  ;;  %s878_s4 = scalar_lea.hbm %s930_s3, %s505_s22 }
  0x3d   : > { %v508_v10 = vpack.c.bf16 %v214_v8, %v210_v7  ;;  %v216_v12 = vld [vmem:[%s845_s21 + $0x30] sm:$0xff]  ;;  %v223_v15 = vld [vmem:[%s845_s21 + $0x68] sm:$0xff]  ;;  %v221_v16 = vld [vmem:[%s845_s21 + $0x58] sm:$0xff]  ;;  %s403_s28 = sshll.u32 %s206_s23, 4  ;;  %s387_s15 = scalar_lea.sflag [#allocation4], %s841_s11  ;;  %s880_s28 = int_to_ptr.vmem [resolvable:$true] %s403_s28 }
  0x3e   : > { %507 = vmatprep.subr.bf16.mxu0 %v506_v5  ;;  %v516_v14 = vpack.c.bf16 %v216_v12, %v212_v11  ;;  %v225_v17 = vld [vmem:[%s845_s21 + $0x78] sm:$0xff]  ;;  %515 = vmatprep.subr.bf16.mxu1 %v514_v9  ;;  %v510_v18 = vpack.c.bf16 %v223_v15, %v219_v13  ;;  %v218_v20 = vld [vmem:[%s845_s21 + $0x40] sm:$0xff]  ;;  %v220_v22 = vld [vmem:[%s845_s21 + $0x50] sm:$0xff]  ;;  %s619_s5 = scalar_lea.vmem %s880_s28, 512  ;;  %p938_p9 = scmp.ne.s32.totalorder %s934_s25, 0 }
  0x3f   : > { %509 = vmatpush1.bf16.msra.mxu0 %v508_v10  ;;  %v518_v19 = vpack.c.bf16 %v225_v17, %v221_v16  ;;  %v222_v21 = vld [vmem:[%s845_s21 + $0x60] sm:$0xff]  ;;  %v224_v24 = vld [vmem:[%s845_s21 + $0x70] sm:$0xff]  ;;  %p620_p8 = scmp.ne.s32.totalorder %s880_s28, %s619_s5  ;;  %s708_s7 = smov [#allocation5]  }
  0x40   : > { %517 = vmatpush1.bf16.msra.mxu1 %v516_v14  ;;  %v512_v23 = vpack.c.bf16 %v222_v21, %v218_v20  ;;  %v226_v25 = vld [vmem:[%s929_s2] sm:$0xff]  ;;  %511 = vmatprep.subr.bf16.mxu0 %v510_v18  ;;  %v520_v26 = vpack.c.bf16 %v224_v24, %v220_v22  ;;  %s623_s18 = sshll.u32 %s708_s7, 4  ;;  %s624_s18 = int_to_ptr.vmem [resolvable:$false] %s623_s18 }
  0x41   : > { %519 = vmatprep.subr.bf16.mxu1 %v518_v19  ;;  %229 = vperm.xlu0 %588, %v226_v25   ;;  %v209_v27 = vld [vmem:[%s928_s1] sm:$0xff]  ;;  %p621_p11 = pnand %p620_p8, %p938_p9  ;;  %s625_s19 = scalar_lea.vmem %s624_s18, 1024 }
  0x42   : > { %p626_p6 = scmp.lt.s32.totalorder %s880_s28, %s624_s18  ;;  %p627_p13 = scmp.lt.s32.totalorder %s625_s19, %s619_s5 }
  0x43   : > { %513 = vmatpush1.bf16.msra.mxu0 %v512_v23  ;;  %p622_p0 = pneg %p621_p11 }
  0x44   : > { %521 = vmatpush1.bf16.msra.mxu1 %v520_v26  ;;  %p628_p2 = por %p627_p13, %p626_p6 }
  0x46   : > { %497 = vmatmul.mubr.msk.f32.vlgmr.msra.gmra.mrb[0].mxu0 %vm232_vm0, %v209_v27  ;;  %p629_p5 = pnand %p628_p2, %p622_p0 }
  0x47   : > { %498 = vmatmul.mubr.msk.f32.vlgmr.msra.gmra.mrb[0].mxu1 %vm232_vm0, %v209_v27 }
  0xc0   : > { %v230_v28 = vpop.permute.xlu0 %229 }
 0x119   : > { %v302_v29 = vpop.f32.mrb[0].mxu0 }
 0x11a   : > { %v303_v30 = vadd.f32 %v302_v29, %v230_v28  ;;  %v373_v31 = vpop.f32.mrb[0].mxu1  ;;  %v304_v32 = vpop.f32.mrb[1].mxu0 }
 0x11b   : > { %v374_v33 = vadd.f32 %v373_v31, %v230_v28  ;;  %v305_v34 = vadd.f32 %v304_v32, %v230_v28  ;;  %v375_v35 = vpop.f32.mrb[1].mxu1 }
 0x11c   : > { %v378_v36 = vmax.f32 %v303_v30, 0.0  ;;  %v376_v37 = vadd.f32 %v375_v35, %v230_v28 }
 0x11d   : > { %v380_v38 = vmax.f32 %v374_v33, 0.0  ;;  %v379_v39 = vmax.f32 %v305_v34, 0.0 }
 0x11e   : > { %382 = vst [vmem:[%s206_s23] sm:$0xff] %v378_v36  ;;  %v381_v40 = vmax.f32 %v376_v37, 0.0 }
 0x11f   : > { %384 = vst [vmem:[%s206_s23 + $0x10] sm:$0xff] %v380_v38  ;;  %383 = vst [vmem:[%s206_s23 + $0x8] sm:$0xff] %v379_v39 }
 0x120   : > { %385 = vst [vmem:[%s206_s23 + $0x18] sm:$0xff] %v381_v40 }
 0x121   : > { %632 = shalt.err (!%p629_p5)
}
 0x122   : > { %s633_s11 = scalar_lea.hbm %s878_s4, 512  ;;  %s637_s6 = scalar_lea.hbm %s930_s3, 1024 }
 0x123   : > { %p634_p4 = scmp.ne.s32.totalorder %s878_s4, %s633_s11  ;;  %p638_p12 = scmp.lt.u32.totalorder %s878_s4, %s930_s3 }
 0x124   : > { %p639_p1 = scmp.lt.u32.totalorder %s637_s6, %s633_s11  ;;  %p641_p8 = scmp.lt.u32.totalorder %s633_s11, %s878_s4 }
 0x125   : > { %p635_p7 = pnand %p634_p4, %p938_p9 }
 0x126   : > { %p640_p3 = por %p639_p1, %p638_p12 }
 0x127   : > { %p636_p10 = pneg %p635_p7 }
 0x128   : > { %p642_p11 = por %p641_p8, %p640_p3 }
 0x12a   : > { %p643_p0 = pnand %p642_p11, %p636_p10 }
 0x12c   : > { %646 = shalt.err (!%p643_p0)
}
 0x12d   : > { %524 = dma.vmem_to_hbm [thread:$0]  (%p938_p9), %s880_s28, 512, %s878_s4, %s387_s15  }
 0x12e PF: > { %s415_s10 = sand.u32 1, %s681_s12   ;;  %p939_p6 = scmp.ne.s32.totalorder %s935_s27, 0 }
 0x12f   : > { %p940_p13 = scmp.ge.s32.totalorder %s701_s17, 2  ;;  %s416_s22 = scalar_lea.sflag [#allocation4], %s415_s10 }
 0x131   : > { %p531_p2 = pnand %p940_p13, %p939_p6 }
 0x133   : > { %676 = dma.done.wait (!%p531_p2), %s416_s22, 512  }
 0x134   : > { %678 = vsyncadd (!%p531_p2), %s416_s22, 4294966784  ;;  %s19_s17 = sadd.s32 1, %s701_s17   ;;  %s941_s12 = smov %s685_s13 }
 0x135   : > { %p16_p5 = scmp.ge.s32.totalorder %s19_s17, 4   ;;  %s942_s13 = smov %s689_s14 }
 0x136   : > { %s943_s14 = smov %s785_s26  ;;  %s944_s15 = smov %s697_s16 }
 0x137   : > { %s945_s16 = smov %s947_s20  ;;  %18 = sbr.rel (!%p16_p5) target bundleno = 6 (0x6), region = 77 }
 0x13e   :  { %421 = vsyncpa [#allocation3], 1 }
 0x13f   :  { %423 = vsyncpa [#allocation3 + $0x1], 1 }
 0x140   :  { %424 = vsyncpa [#allocation4], 1 }
 0x141   :  { %426 = vsyncpa [#allocation4 + $0x1], 1 }

</bundles_post_ra>
